<compile_context>
chip_gen: v5e
topology: v5e:2x2
jax: 0.10.0
libtpu: 0.0.40
codegen_flags: <defaults>
</compile_context>

<pallas_src>
import jax
import jax.numpy as jnp
from jax.experimental import pallas as pl
from jax.experimental.pallas import tpu as pltpu

VMEM = pltpu.MemorySpace.VMEM
_VMEM_LIMIT = 32 * 1024 * 1024   # explicit scoped-VMEM budget (safe on v5e/v6e/v7x)
_LANE = 128


def _cpad(c):
    """Pad a channel count up to a multiple of 128 lanes."""
    return ((c + _LANE - 1) // _LANE) * _LANE


def _pick_tile(dim, prefs):
    """Largest preferred tile that evenly divides `dim`, else the whole dim."""
    for p in prefs:
        if dim >= p and dim % p == 0:
            return p
    return dim


# ------------------------- Pallas kernels -------------------------

def _matmul_bias_act(x, w, bias, *, relu, residual=None, out_dtype=jnp.bfloat16):
    """out = maybe_relu(x @ w + bias [+ residual]), gridded over (M, Cout) tiles.

    x: (M, K) bf16; w: (K, Npad) bf16 with BN scale pre-folded; bias: (1, Npad) f32.
    """
    M, K = x.shape
    Npad = w.shape[1]
    tile_m = _pick_tile(M, (256, 128, 512))
    # 256-wide N tiles feed v6e/v7x's 2x256^2 MXU; falls back to 128 (v5e native).
    tile_n = _pick_tile(Npad, (256, 128))
    has_res = residual is not None

    def kernel(*refs):
        if has_res:
            x_ref, w_ref, b_ref, r_ref, o_ref = refs
        else:
            x_ref, w_ref, b_ref, o_ref = refs
        acc = jnp.dot(x_ref[...], w_ref[...], preferred_element_type=jnp.float32)
        acc = acc + b_ref[...]                       # f32 epilogue
        if has_res:
            acc = acc + r_ref[...].astype(jnp.float32)
        if relu:
            acc = jnp.maximum(acc, 0.0)
        o_ref[...] = acc.astype(o_ref.dtype)

    in_specs = [
        pl.BlockSpec((tile_m, K), lambda i, j: (i, 0)),
        pl.BlockSpec((K, tile_n), lambda i, j: (0, j)),
        pl.BlockSpec((1, tile_n), lambda i, j: (0, j)),
    ]
    args = [x, w, bias]
    if has_res:
        in_specs.append(pl.BlockSpec((tile_m, tile_n), lambda i, j: (i, j)))
        args.append(residual)

    return pl.pallas_call(
        kernel,
        out_shape=jax.ShapeDtypeStruct((M, Npad), out_dtype),
        grid=(M // tile_m, Npad // tile_n),
        in_specs=in_specs,
        out_specs=pl.BlockSpec((tile_m, tile_n), lambda i, j: (i, j)),
        compiler_params=pltpu.CompilerParams(
            dimension_semantics=("parallel", "parallel"),
            vmem_limit_bytes=_VMEM_LIMIT),
    )(*args)


def _depthwise3x3_bn_relu(x, w9, bias, stride):
    """Depthwise 3x3 (pad=1) + folded-BN bias + ReLU.

    x: (N,H,W,C) bf16; w9: (9,1,C) f32 (BN scale folded); bias: (1,C) f32.
    The wrapper builds 3 column-phase views (kernel column offset dj, stride already
    applied along W), so only ~3x the padded input moves through HBM instead of the
    9x im2col patch stack; the 3 row taps are formed inside the kernel by indexing
    the VMEM-resident block along its (untiled) row axis.
    """
    N, H, W, C = x.shape
    Ho = (H - 1) // stride + 1
    Wo = (W - 1) // stride + 1
    Hp = H + 2
    xp = jnp.pad(x, ((0, 0), (1, 1), (1, 1), (0, 0)))
    phases = jnp.concatenate(
        [xp[:, :, dj:dj + (Wo - 1) * stride + 1:stride, :] for dj in range(3)],
        axis=1)                                         # (N, 3*Hp, Wo, C)

    def kernel(x_ref, w_ref, b_ref, o_ref):
        b = b_ref[...]                                  # (1, C) f32
        for h in range(Ho):                             # static unroll, Ho <= 16
            acc = jnp.zeros((Wo, C), jnp.float32)
            for di in range(3):
                for dj in range(3):
                    row = x_ref[0, dj * Hp + h * stride + di, :, :]     # (Wo, C)
                    acc = acc + row.astype(jnp.float32) * w_ref[3 * di + dj]
            o_ref[0, h, :, :] = jnp.maximum(acc + b, 0.0).astype(o_ref.dtype)

    return pl.pallas_call(
        kernel,
        out_shape=jax.ShapeDtypeStruct((N, Ho, Wo, C), x.dtype),
        grid=(N,),
        in_specs=[
            pl.BlockSpec((1, 3 * Hp, Wo, C), lambda n: (n, 0, 0, 0)),
            pl.BlockSpec((9, 1, C), lambda n: (0, 0, 0)),
            pl.BlockSpec((1, C), lambda n: (0, 0)),
        ],
        out_specs=pl.BlockSpec((1, Ho, Wo, C), lambda n: (n, 0, 0, 0)),
        compiler_params=pltpu.CompilerParams(
            dimension_semantics=("parallel",),
            vmem_limit_bytes=_VMEM_LIMIT),
    )(phases, w9, bias)


def _gap_classifier(x, w, bias):
    """Fused global-average-pool + Linear head: (x.mean over H,W) @ w + bias."""
    N, H, W, C = x.shape
    HW = H * W
    x3 = x.reshape(N, HW, C)
    Npad = w.shape[1]

    def kernel(x_ref, w_ref, b_ref, o_ref):
        pooled = jnp.sum(x_ref[...].astype(jnp.float32), axis=1) * (1.0 / HW)
        o_ref[...] = (jnp.dot(pooled.astype(w_ref.dtype), w_ref[...],
                              preferred_element_type=jnp.float32) + b_ref[...])

    return pl.pallas_call(
        kernel,
        out_shape=jax.ShapeDtypeStruct((N, Npad), jnp.float32),
        in_specs=[pl.BlockSpec(memory_space=VMEM)] * 3,
        out_specs=pl.BlockSpec(memory_space=VMEM),
        compiler_params=pltpu.CompilerParams(vmem_limit_bytes=_VMEM_LIMIT),
    )(x3, w, bias)


# ------------------------- thin JAX wrappers (layout only) -------------------------

def conv1x1_bn(x, w, bias, *, relu, residual=None):
    """Pointwise conv + folded BN (+ optional fused residual add)."""
    N, H, W, Cin = x.shape
    Cout = w.shape[1]
    xm = x.reshape(N * H * W, Cin)
    res = residual.reshape(N * H * W, Cout) if residual is not None else None
    out = _matmul_bias_act(xm, w, bias, relu=relu, residual=res)
    return out.reshape(N, H, W, Cout)


def conv3x3_stem(x, w, bias):
    """Stem: standard 3x3 conv, stride 1, pad 1, as a K=9*Cin matmul.
    The im2col columns are built with a single concat (no (9,M,C) stack + transpose)."""
    N, H, W, Cin = x.shape
    xp = jnp.pad(x, ((0, 0), (1, 1), (1, 1), (0, 0)))
    cols = jnp.concatenate(
        [xp[:, di:di + H, dj:dj + W, :] for di in range(3) for dj in range(3)],
        axis=-1).reshape(N * H * W, 9 * Cin)
    out = _matmul_bias_act(cols, w, bias, relu=True)
    return out.reshape(N, H, W, w.shape[1])


# ------------------------- parameters -------------------------

_SETTING = [  # MobileNetV2 inverted residual setting: (t, c, n, s)
    (1, 16, 1, 1), (6, 24, 2, 2), (6, 32, 3, 2), (6, 64, 4, 2),
    (6, 96, 3, 1), (6, 160, 3, 2), (6, 320, 1, 1),
]


def _fold_bn(key, c):
    """Deterministic BN params folded to (scale, bias) for inference."""
    k1, k2 = jax.random.split(key)
    gamma = 1.0 + 0.01 * jax.random.normal(k1, (c,), jnp.float32)
    beta = 0.01 * jax.random.normal(k2, (c,), jnp.float32)
    mean = jnp.zeros((c,), jnp.float32)
    var = jnp.ones((c,), jnp.float32)
    scale = gamma / jnp.sqrt(var + 1e-5)
    bias = beta - mean * scale
    return scale, bias


def _prep_weight(w, scale, kpad, npad):
    """Fold BN scale into output columns, zero-pad to (kpad, npad), cast to bf16."""
    if scale is not None:
        w = w * scale[None, :]
    K, Nc = w.shape
    w = jnp.pad(w, ((0, kpad - K), (0, npad - Nc)))
    return w.astype(jnp.bfloat16)


def _prep_bias(b, npad):
    return jnp.pad(b, (0, npad - b.shape[0])).reshape(1, npad).astype(jnp.float32)


def init_params(key, num_classes=10):
    keys = iter(jax.random.split(key, 256))
    params = {"num_classes": num_classes}

    # stem: Conv2d(3, 32, k=3, stride=1, padding=1, bias=False) + BN + ReLU
    w0 = jax.random.normal(next(keys), (3, 3, 3, 32), jnp.float32) * (2.0 / 27) ** 0.5
    s0, b0 = _fold_bn(next(keys), 32)
    params["conv0"] = dict(
        w=_prep_weight(w0.reshape(27, 32), s0, 27, _cpad(32)),
        b=_prep_bias(b0, _cpad(32)),
    )

    blocks = []
    cin = 32
    for t, c, n, s in _SETTING:
        for i in range(n):
            stride = s if i == 0 else 1
            hidden = cin * t
            cin_p, hid_p, c_p = _cpad(cin), _cpad(hidden), _cpad(c)
            blk = dict(stride=stride, use_res=(stride == 1 and cin == c))
            if t != 1:
                ew = (jax.random.normal(next(keys), (cin, hidden), jnp.float32)
                      * (2.0 / cin) ** 0.5)
                es, eb = _fold_bn(next(keys), hidden)
                blk["expand_w"] = _prep_weight(ew, es, cin_p, hid_p)
                blk["expand_b"] = _prep_bias(eb, hid_p)
            else:
                blk["expand_w"] = None
            dw = (jax.random.normal(next(keys), (3, 3, hidden), jnp.float32)
                  * (2.0 / 9) ** 0.5)
            ds, db = _fold_bn(next(keys), hidden)
            dw = (dw * ds[None, None, :]).reshape(9, 1, hidden)
            blk["dw_w"] = jnp.pad(dw, ((0, 0), (0, 0), (0, hid_p - hidden))).astype(jnp.float32)
            blk["dw_b"] = _prep_bias(db, hid_p)
            pw = (jax.random.normal(next(keys), (hidden, c), jnp.float32)
                  * (1.0 / hidden) ** 0.5)
            ps, pb = _fold_bn(next(keys), c)
            blk["proj_w"] = _prep_weight(pw, ps, hid_p, c_p)
            blk["proj_b"] = _prep_bias(pb, c_p)
            blocks.append(blk)
            cin = c
    params["blocks"] = blocks

    # final ConvBNReLU 320 -> 1280
    lw = jax.random.normal(next(keys), (cin, 1280), jnp.float32) * (2.0 / cin) ** 0.5
    ls, lb = _fold_bn(next(keys), 1280)
    params["last"] = dict(w=_prep_weight(lw, ls, _cpad(cin), 1280),
                          b=_prep_bias(lb, 1280))

    # classifier: Linear(1280, num_classes), output lane-padded to 128
    cw = (jax.random.normal(next(keys), (1280, num_classes), jnp.float32)
          * (1.0 / 1280) ** 0.5)
    cb = 0.01 * jax.random.normal(next(keys), (num_classes,), jnp.float32)
    params["cls_w"] = _prep_weight(cw, None, 1280, _cpad(num_classes))
    params["cls_b"] = _prep_bias(cb, _cpad(num_classes))
    return params


# ------------------------- forward -------------------------

def quantizable_student_forward(params, x_nchw):
    # QuantStub: identity in float mode.
    x = jnp.transpose(x_nchw, (0, 2, 3, 1)).astype(jnp.bfloat16)  # NCHW -> NHWC bf16

    x = conv3x3_stem(x, params["conv0"]["w"], params["conv0"]["b"])

    for blk in params["blocks"]:
        h = x
        if blk["expand_w"] is not None:
            h = conv1x1_bn(h, blk["expand_w"], blk["expand_b"], relu=True)
        # TODO(synk): fuse expand->depthwise->project into a single pallas_call per
        # block with the hidden activation held in VMEM scratch (needs in-kernel halo
        # / sublane-shift handling); kept as three gridded kernels for robustness.
        h = _depthwise3x3_bn_relu(h, blk["dw_w"], blk["dw_b"], blk["stride"])
        # FloatFunctional skip_add fused into the projection matmul kernel.
        res = x if blk["use_res"] else None
        x = conv1x1_bn(h, blk["proj_w"], blk["proj_b"], relu=False, residual=res)

    x = conv1x1_bn(x, params["last"]["w"], params["last"]["b"], relu=True)

    # TODO(synk): nn.Dropout(p=0.1) is an inference-mode identity here (no train mask).
    logits = _gap_classifier(x, params["cls_w"], params["cls_b"])  # (N, 128) f32
    # DeQuantStub: identity; slice the lane padding back to the true class count.
    return logits[:, :params["num_classes"]]


if __name__ == "__main__":
    key = jax.random.PRNGKey(0)
    pkey, xkey = jax.random.split(key)
    params = init_params(pkey, num_classes=10)
    x = jax.random.normal(xkey, (2, 3, 16, 16), jnp.float32)  # NCHW, like PyTorch
    out = quantizable_student_forward(params, x)
    out = jax.block_until_ready(out)
    assert out.shape == (2, 10), out.shape
    assert bool(jnp.all(jnp.isfinite(out)))
    print("KERNEL_OK")
</pallas_src>

<mosaic_0001>
module attributes {stable_mosaic.version = 11 : i64} {
  func.func @kernel(%arg0: i32, %arg1: i32, %arg2: memref<256x27xbf16, #tpu.memory_space<vmem>>, %arg3: memref<27x128xbf16, #tpu.memory_space<vmem>>, %arg4: memref<1x128xf32, #tpu.memory_space<vmem>>, %arg5: memref<256x128xbf16, #tpu.memory_space<vmem>>) attributes {dimension_semantics = [#tpu.dimension_semantics<parallel>, #tpu.dimension_semantics<parallel>], iteration_bounds = array<i64: 2, 1>, scalar_prefetch = 0 : i64, scratch_operands = 0 : i64, tpu.core_type = #tpu.core_type<tc>, window_params = [{transform_indices = @transform_0, window_bounds = array<i64: 256, 27>}, {transform_indices = @transform_1, window_bounds = array<i64: 27, 128>}, {transform_indices = @transform_2, window_bounds = array<i64: 1, 128>}, {transform_indices = @transform_3, window_bounds = array<i64: 256, 128>}]} {
    %c0 = arith.constant 0 : index
    %c0_0 = arith.constant 0 : index
    %0 = vector.load %arg2[%c0, %c0_0] : memref<256x27xbf16, #tpu.memory_space<vmem>>, vector<256x27xbf16>
    %c0_1 = arith.constant 0 : index
    %c0_2 = arith.constant 0 : index
    %1 = vector.load %arg3[%c0_1, %c0_2] : memref<27x128xbf16, #tpu.memory_space<vmem>>, vector<27x128xbf16>
    %cst = arith.constant dense<0.000000e+00> : vector<256x128xf32>
    %2 = tpu.matmul %0, %1, %cst {dimension_numbers = #tpu.dot_dimension_numbers<[1], [0], [0], [1], [0, 0, 1, 1], [], []>} : vector<256x27xbf16>, vector<27x128xbf16>, vector<256x128xf32> -> vector<256x128xf32>
    %c0_3 = arith.constant 0 : index
    %c0_4 = arith.constant 0 : index
    %3 = vector.load %arg4[%c0_3, %c0_4] : memref<1x128xf32, #tpu.memory_space<vmem>>, vector<1x128xf32>
    %4 = vector.broadcast %3 : vector<1x128xf32> to vector<256x128xf32>
    %5 = arith.addf %2, %4 : vector<256x128xf32>
    %cst_5 = arith.constant 0.000000e+00 : f32
    %6 = vector.broadcast %cst_5 : f32 to vector<256x128xf32>
    %7 = arith.maximumf %5, %6 : vector<256x128xf32>
    %8 = arith.truncf %7 : vector<256x128xf32> to vector<256x128xbf16>
    %c0_6 = arith.constant 0 : index
    %c0_7 = arith.constant 0 : index
    %9 = vector.load %arg5[%c0_6, %c0_7] : memref<256x128xbf16, #tpu.memory_space<vmem>>, vector<256x128xbf16>
    tpu.vector_store %arg5[%c0_6, %c0_7], %8 {strides = array<i32>} : memref<256x128xbf16, #tpu.memory_space<vmem>>, vector<256x128xbf16>,
    return
  }
  func.func @transform_0(%arg0: i32, %arg1: i32) -> (i32, i32) {
    %c0_i32 = arith.constant 0 : i32
    %c0_i32_0 = arith.constant 0 : i32
    return %arg0, %c0_i32 : i32, i32
  }
  func.func @transform_1(%arg0: i32, %arg1: i32) -> (i32, i32) {
    %c0_i32 = arith.constant 0 : i32
    %c0_i32_0 = arith.constant 0 : i32
    return %c0_i32, %arg1 : i32, i32
  }
  func.func @transform_2(%arg0: i32, %arg1: i32) -> (i32, i32) {
    %c0_i32 = arith.constant 0 : i32
    %c0_i32_0 = arith.constant 0 : i32
    return %c0_i32, %arg1 : i32, i32
  }
  func.func @transform_3(%arg0: i32, %arg1: i32) -> (i32, i32) {
    %c0_i32 = arith.constant 0 : i32
    return %arg0, %arg1 : i32, i32
  }
}

</mosaic_0001>

<bundles_post_ra>
// kernel: tpu_custom_call.1
= control target key start
LH: loop header
LB: loop body
LE: loop exit
PB: predicated region body
PF: predicated region fallthrough
CT: control target
= control target key end

     0   :  { %8 = vsyncpa [#allocation3], 0  ;;  %s1290_s0 = inlined_call_operand.vmem [shape: bf16[512,27], index: 0, kind: input, shape index: {}]   ;;  %s1291_s1 = inlined_call_operand.vmem [shape: bf16[27,128], index: 1, kind: input, shape index: {}]   ;;  %s1292_s2 = inlined_call_operand.vmem [shape: f32[1,128], index: 2, kind: input, shape index: {}]   ;;  %s1293_s3 = inlined_call_operand.hbm [shape: bf16[512,128], index: 3, kind: output, shape index: {}]  }
   0x1   :  { %10 = vsyncpa [#allocation3 + $0x1], 0  ;;  %s1091_s12 = smov 0   ;;  %s1093_s13 = smov 0  }
   0x2   :  { %s1095_s14 = smov 0   ;;  %s1097_s15 = smov 0  }
   0x3   :  { %s1099_s16 = smov 0   ;;  %s1101_s17 = smov 0  }
   0x4 LB: > { %s706_s18 = sadd.s32 4294967295, %s1066_s17   ;;  %s707_s19 = sadd.s32 4294967294, %s1066_s17   ;;  %s1066_s17 = sphi %s1101_s17, %s16_s17   ;;  %s1062_s16 = sphi %s1099_s16, %s1300_s16   ;;  %s1058_s15 = sphi %s1097_s15, %s1299_s15   ;;  %s1054_s14 = sphi %s1095_s14, %s1298_s14   ;;  %s1050_s13 = sphi %s1093_s13, %s1297_s13   ;;  %s1046_s12 = sphi %s1091_s12, %s1296_s12  }
   0x5   : > { %s28_s20 = sadd.s32 1, %s1062_s16  ;;  %s115_s21 = sadd.s32 1, %s1054_s14 }
   0x6   : > { %p30_p0 = scmp.ge.s32.totalorder %s28_s20, 2  ;;  %p125_p1 = scmp.ne.s32.totalorder %s1054_s14, %s1050_s13 }
   0x7   : > { %p126_p2 = scmp.eq.s32.totalorder %s706_s18, 1  ;;  %p131_p3 = scmp.ne.s32.totalorder %s1050_s13, %s1046_s12 }
   0x8   : > { %s1302_s20 = smov (%p30_p0, %s28_s20), 0  ;;  %p132_p5 = scmp.eq.s32.totalorder %s707_s19, 1 }
   0x9   : > { %p1131_p4 = por %p126_p2, %p125_p1  ;;  %s110_s23 = ssub.s32 %s1062_s16, %s1302_s20 }
   0xa   : > { %p712_p6 = scmp.ge.s32.totalorder %s1066_s17, 1  ;;  %p113_p7 = scmp.eq.s32.totalorder %s110_s23, 0 }
   0xb   : > { %p1138_p8 = por %p132_p5, %p131_p3  ;;  %p172_p9 = scmp.lt.s32.totalorder %s1066_s17, 3 }
   0xc   : > { %s1144_s25 = scalar_select %p113_p7, %s1054_s14, %s115_s21  }
   0xd   : > { %p173_p10 = pnand %p712_p6, %p172_p9 }
   0xe   : > { %s714_s30 = sshll.u32 (!%p173_p10), %s1058_s15, 5  ;;  %s200_s18 = sand.u32 (!%p173_p10), 1, %s1050_s13  }
   0xf   : > { %176 = sbr.rel (%p173_p10) target bundleno = 233 (0xe9), region = 32  ;;  %p204_p11 = scmp.lt.s32.totalorder (!%p173_p10), %s714_s30, 63 }
  0x10   : > { %s713_s19 = sshll.u32 (!%p173_p10), %s200_s18, 7  ;;  %s827_s23 = sshll.u32 (!%p173_p10), %s1058_s15, 7 }
  0x11   : > { %s1207_s21 = scalar_lea.vmem (!%p173_p10), [#allocation2], %s713_s19  ;;  %s603_s28 = scalar_lea.hbm (!%p173_p10), %s1293_s3, %s827_s23 }
  0x12   : > { %s604_s15 = sshll.u32 (!%p173_p10), %s1207_s21, 4  ;;  %s606_s29 = sshll.u32 (!%p173_p10), %s603_s28, 4  ;;  %s605_s15 = int_to_ptr.vmem [resolvable:$true] %s604_s15  ;;  %s607_s29 = int_to_ptr.hbm [resolvable:$true] %s606_s29 }
  0x13   : > { %s1002_s4 = sshra.s32 (!%p173_p10), %s607_s29, 4  ;;  %s1008_s8 = scalar_lea.hbm (!%p173_p10), %s1293_s3, 256  ;;  %s1003_s4 = int_to_ptr.hbm [resolvable:$true] %s1002_s4 }
  0x14   : > { %v786_v0 = vld [vmem:[%s1291_s1 + $0x8] sm:$0xf]  ;;  %v826_v1 = vld [vmem:[%s1291_s1 + $0x8] sm:$0x30]  ;;  %vm398_vm0 = vcmask 1044480   ;;  %vm399_vm1 = vcmask 1045504   ;;  %p1009_p1 = scmp.lt.s32.totalorder %s1003_s4, %s1293_s3 }
  0x15   : > { %v787_v2 = vor.u32 %v826_v1, %v786_v0  ;;  %v1068_v3 = vmov 65535   ;;  %s1304_s30 = smov (!%p204_p11, %s714_s30), 63  ;;  %v825_v7 = vld [vmem:[%s1291_s1] sm:$0xff]  ;;  %vm349_vm2 = vcmask 220160   ;;  %s1004_s5 = scalar_lea.hbm %s1003_s4, 128 }
  0x16   : > { %v400_v4 = vsel %vm398_vm0, 4294967295, %v1068_v3  ;;  %s715_s6 = sshll.u32 %s1304_s30, 2  ;;  %v1196_v26 = vld [vmem:[%s1292_s2] ss:$0 sm:$0xff]  ;;  %s591_s30 = scalar_lea.sflag [#allocation3], %s200_s18 }
  0x17   : > { %v401_v5 = vsel %vm399_vm1, %v400_v4, 0  ;;  %s1159_s9 = scalar_lea.vmem %s1290_s0, %s715_s6  ;;  %p1005_p12 = scmp.ne.s32.totalorder %s1003_s4, %s1004_s5 }
  0x18   : > { %v403_v6 = vand.u32 %v787_v2, %v401_v5  ;;  %v809_v8 = vld [vmem:[%s1159_s9] sm:$0xff]  ;;  %v810_v12 = vld [vmem:[%s1159_s9 + $0x8] sm:$0xff]  ;;  %v811_v16 = vld [vmem:[%s1159_s9 + $0x10] sm:$0xff]  ;;  %p1010_p2 = scmp.lt.s32.totalorder %s1008_s8, %s1004_s5 }
  0x19   : > { %v813_v9 = vld [vmem:[%s1159_s9 + $0x20] sm:$0xff]  ;;  %v814_v13 = vld [vmem:[%s1159_s9 + $0x28] sm:$0xff]  ;;  %v815_v17 = vld [vmem:[%s1159_s9 + $0x30] sm:$0xff]  ;;  %p1006_p13 = pnand %p1005_p12, %p1131_p4 }
  0x1a   : > { %411 = vmatpush.bf16.msra.mxu0 %v403_v6  ;;  %923 = vmatpush.bf16.msra.mxu1 %v403_v6  ;;  %v817_v10 = vld [vmem:[%s1159_s9 + $0x40] sm:$0xff]  ;;  %v818_v14 = vld [vmem:[%s1159_s9 + $0x48] sm:$0xff]  ;;  %v819_v18 = vld [vmem:[%s1159_s9 + $0x50] sm:$0xff]  ;;  %p1011_p3 = por %p1010_p2, %p1009_p1 }
  0x1b   : > { %924 = vmatpush.bf16.msra.mxu2 %v403_v6  ;;  %925 = vmatpush.bf16.msra.mxu3 %v403_v6  ;;  %v821_v11 = vld [vmem:[%s1159_s9 + $0x60] sm:$0xff]  ;;  %v822_v15 = vld [vmem:[%s1159_s9 + $0x68] sm:$0xff]  ;;  %v823_v19 = vld [vmem:[%s1159_s9 + $0x70] sm:$0xff]  ;;  %p1007_p0 = pneg %p1006_p13 }
  0x1c   : > { %v812_v20 = vld [vmem:[%s1159_s9 + $0x18] sm:$0xff] }
  0x1d   : > { %v816_v21 = vld [vmem:[%s1159_s9 + $0x38] sm:$0xff]  ;;  %p1012_p5 = pnand %p1011_p3, %p1007_p0 }
  0x1e   : > { %412 = vmatpush.bf16.msra.mxu0 %v825_v7  ;;  %926 = vmatpush.bf16.msra.mxu1 %v825_v7  ;;  %v820_v22 = vld [vmem:[%s1159_s9 + $0x58] sm:$0xff] }
  0x1f   : > { %927 = vmatpush.bf16.msra.mxu2 %v825_v7  ;;  %928 = vmatpush.bf16.msra.mxu3 %v825_v7  ;;  %v824_v23 = vld [vmem:[%s1159_s9 + $0x78] sm:$0xff] }
  0x21   : > { %788 = vmatmul.msk.bf16.vlgmr.msra.gmra.mxu0 %vm349_vm2, %v809_v8  ;;  %792 = vmatmul.msk.bf16.vlgmr.msra.gmra.mxu1 %vm349_vm2, %v813_v9 }
  0x22   : > { %796 = vmatmul.msk.bf16.vlgmr.msra.gmra.mxu2 %vm349_vm2, %v817_v10  ;;  %800 = vmatmul.msk.bf16.vlgmr.msra.gmra.mxu3 %vm349_vm2, %v821_v11 }
  0x31   : > { %789 = vmatmul.msk.bf16.gmra.mxu0 %vm349_vm2, %v810_v12  ;;  %793 = vmatmul.msk.bf16.gmra.mxu1 %vm349_vm2, %v814_v13 }
  0x32   : > { %797 = vmatmul.msk.bf16.gmra.mxu2 %vm349_vm2, %v818_v14  ;;  %801 = vmatmul.msk.bf16.gmra.mxu3 %vm349_vm2, %v822_v15 }
  0x41   : > { %790 = vmatmul.msk.bf16.gmra.mxu0 %vm349_vm2, %v811_v16  ;;  %794 = vmatmul.msk.bf16.gmra.mxu1 %vm349_vm2, %v815_v17 }
  0x42   : > { %798 = vmatmul.msk.bf16.gmra.mxu2 %vm349_vm2, %v819_v18  ;;  %802 = vmatmul.msk.bf16.gmra.mxu3 %vm349_vm2, %v823_v19 }
  0x51   : > { %791 = vmatmul.msk.bf16.gmra.mxu0 %vm349_vm2, %v812_v20  ;;  %795 = vmatmul.msk.bf16.gmra.mxu1 %vm349_vm2, %v816_v21 }
  0x52   : > { %799 = vmatmul.msk.bf16.gmra.mxu2 %vm349_vm2, %v820_v22  ;;  %803 = vmatmul.msk.bf16.gmra.mxu3 %vm349_vm2, %v824_v23 }
  0x9e   : > { %v414_v24 = vpop.f32.mrf.mxu0  ;;  %v434_v25 = vpop.f32.mrf.mxu1 }
  0x9f   : > { %v415_v27 = vadd.f32 %v1196_v26, %v414_v24  ;;  %v435_v28 = vadd.f32 %v1196_v26, %v434_v25 }
  0xa1   : > { %v494_v35 = vmax.f32 %v415_v27, 0.0  ;;  %v502_v36 = vmax.f32 %v435_v28, 0.0 }
  0xa5   : > { %v454_v29 = vpop.f32.mrf.mxu2  ;;  %v474_v30 = vpop.f32.mrf.mxu3 }
  0xa6   : > { %v416_v31 = vpop.f32.mrf.mxu0  ;;  %v436_v32 = vpop.f32.mrf.mxu1  ;;  %v455_v41 = vadd.f32 %v1196_v26, %v454_v29  ;;  %v475_v42 = vadd.f32 %v1196_v26, %v474_v30 }
  0xa7   : > { %v417_v33 = vadd.f32 %v1196_v26, %v416_v31  ;;  %v437_v34 = vadd.f32 %v1196_v26, %v436_v32 }
  0xa8   : > { %v510_v49 = vmax.f32 %v455_v41, 0.0  ;;  %v518_v50 = vmax.f32 %v475_v42, 0.0 }
  0xa9   : > { %v495_v37 = vmax.f32 %v417_v33, 0.0  ;;  %v503_v38 = vmax.f32 %v437_v34, 0.0 }
  0xab   : > { %v831_v39 = vpack.c.bf16 %v495_v37, %v494_v35  ;;  %v851_v40 = vpack.c.bf16 %v503_v38, %v502_v36 }
  0xad   : > { %832 = vst [vmem:[%s1207_s21] sm:$0xff] %v831_v39   ;;  %v456_v43 = vpop.f32.mrf.mxu2  ;;  %v476_v44 = vpop.f32.mrf.mxu3 }
  0xae   : > { %911 = vst [vmem:[%s1207_s21 + $0x20] sm:$0xff] %v851_v40   ;;  %v457_v45 = vadd.f32 %v1196_v26, %v456_v43  ;;  %v477_v46 = vadd.f32 %v1196_v26, %v476_v44  ;;  %v419_v47 = vpop.f32.mrf.mxu0  ;;  %v439_v48 = vpop.f32.mrf.mxu1 }
  0xaf   : > { %v420_v55 = vadd.f32 %v1196_v26, %v419_v47  ;;  %v440_v56 = vadd.f32 %v1196_v26, %v439_v48 }
  0xb0   : > { %v511_v51 = vmax.f32 %v457_v45, 0.0  ;;  %v519_v52 = vmax.f32 %v477_v46, 0.0 }
  0xb1   : > { %v496_v63 = vmax.f32 %v420_v55, 0.0  ;;  %v504_v0 = vmax.f32 %v440_v56, 0.0 }
  0xb2   : > { %v871_v53 = vpack.c.bf16 %v511_v51, %v510_v49  ;;  %v891_v54 = vpack.c.bf16 %v519_v52, %v518_v50 }
  0xb4   : > { %915 = vst [vmem:[%s1207_s21 + $0x40] sm:$0xff] %v871_v53  }
  0xb5   : > { %919 = vst [vmem:[%s1207_s21 + $0x60] sm:$0xff] %v891_v54   ;;  %v459_v57 = vpop.f32.mrf.mxu2  ;;  %v479_v58 = vpop.f32.mrf.mxu3 }
  0xb6   : > { %v421_v59 = vpop.f32.mrf.mxu0  ;;  %v441_v60 = vpop.f32.mrf.mxu1  ;;  %v460_v5 = vadd.f32 %v1196_v26, %v459_v57  ;;  %v480_v6 = vadd.f32 %v1196_v26, %v479_v58 }
  0xb7   : > { %v422_v61 = vadd.f32 %v1196_v26, %v421_v59  ;;  %v442_v62 = vadd.f32 %v1196_v26, %v441_v60 }
  0xb8   : > { %v512_v13 = vmax.f32 %v460_v5, 0.0  ;;  %v520_v14 = vmax.f32 %v480_v6, 0.0 }
  0xb9   : > { %v497_v1 = vmax.f32 %v422_v61, 0.0  ;;  %v505_v2 = vmax.f32 %v442_v62, 0.0 }
  0xbb   : > { %v836_v3 = vpack.c.bf16 %v497_v1, %v496_v63  ;;  %v856_v4 = vpack.c.bf16 %v505_v2, %v504_v0 }
  0xbd   : > { %908 = vst [vmem:[%s1207_s21 + $0x8] sm:$0xff] %v836_v3   ;;  %v461_v7 = vpop.f32.mrf.mxu2  ;;  %v481_v8 = vpop.f32.mrf.mxu3 }
  0xbe   : > { %912 = vst [vmem:[%s1207_s21 + $0x28] sm:$0xff] %v856_v4   ;;  %v462_v9 = vadd.f32 %v1196_v26, %v461_v7  ;;  %v482_v10 = vadd.f32 %v1196_v26, %v481_v8  ;;  %v424_v11 = vpop.f32.mrf.mxu0  ;;  %v444_v12 = vpop.f32.mrf.mxu1 }
  0xbf   : > { %v425_v19 = vadd.f32 %v1196_v26, %v424_v11  ;;  %v445_v20 = vadd.f32 %v1196_v26, %v444_v12 }
  0xc0   : > { %v513_v15 = vmax.f32 %v462_v9, 0.0  ;;  %v521_v16 = vmax.f32 %v482_v10, 0.0 }
  0xc1   : > { %v498_v28 = vmax.f32 %v425_v19, 0.0  ;;  %v506_v29 = vmax.f32 %v445_v20, 0.0 }
  0xc2   : > { %v876_v17 = vpack.c.bf16 %v513_v15, %v512_v13  ;;  %v896_v18 = vpack.c.bf16 %v521_v16, %v520_v14 }
  0xc4   : > { %916 = vst [vmem:[%s1207_s21 + $0x48] sm:$0xff] %v876_v17  }
  0xc5   : > { %920 = vst [vmem:[%s1207_s21 + $0x68] sm:$0xff] %v896_v18   ;;  %v464_v21 = vpop.f32.mrf.mxu2  ;;  %v484_v22 = vpop.f32.mrf.mxu3 }
  0xc6   : > { %v426_v23 = vpop.f32.mrf.mxu0  ;;  %v446_v24 = vpop.f32.mrf.mxu1  ;;  %v465_v34 = vadd.f32 %v1196_v26, %v464_v21  ;;  %v485_v35 = vadd.f32 %v1196_v26, %v484_v22 }
  0xc7   : > { %v427_v25 = vadd.f32 %v1196_v26, %v426_v23  ;;  %v447_v27 = vadd.f32 %v1196_v26, %v446_v24 }
  0xc8   : > { %v514_v42 = vmax.f32 %v465_v34, 0.0  ;;  %v522_v43 = vmax.f32 %v485_v35, 0.0 }
  0xc9   : > { %v499_v30 = vmax.f32 %v427_v25, 0.0  ;;  %v507_v31 = vmax.f32 %v447_v27, 0.0 }
  0xcb   : > { %v841_v32 = vpack.c.bf16 %v499_v30, %v498_v28  ;;  %v861_v33 = vpack.c.bf16 %v507_v31, %v506_v29 }
  0xcd   : > { %909 = vst [vmem:[%s1207_s21 + $0x10] sm:$0xff] %v841_v32   ;;  %v466_v36 = vpop.f32.mrf.mxu2  ;;  %v486_v37 = vpop.f32.mrf.mxu3 }
  0xce   : > { %913 = vst [vmem:[%s1207_s21 + $0x30] sm:$0xff] %v861_v33   ;;  %v467_v38 = vadd.f32 %v1196_v26, %v466_v36  ;;  %v487_v39 = vadd.f32 %v1196_v26, %v486_v37  ;;  %v429_v40 = vpop.f32.mrf.mxu0  ;;  %v449_v41 = vpop.f32.mrf.mxu1 }
  0xcf   : > { %v430_v48 = vadd.f32 %v1196_v26, %v429_v40  ;;  %v450_v49 = vadd.f32 %v1196_v26, %v449_v41 }
  0xd0   : > { %v515_v44 = vmax.f32 %v467_v38, 0.0  ;;  %v523_v45 = vmax.f32 %v487_v39, 0.0 }
  0xd1   : > { %v500_v56 = vmax.f32 %v430_v48, 0.0  ;;  %v508_v57 = vmax.f32 %v450_v49, 0.0 }
  0xd2   : > { %v881_v46 = vpack.c.bf16 %v515_v44, %v514_v42  ;;  %v901_v47 = vpack.c.bf16 %v523_v45, %v522_v43 }
  0xd4   : > { %917 = vst [vmem:[%s1207_s21 + $0x50] sm:$0xff] %v881_v46  }
  0xd5   : > { %921 = vst [vmem:[%s1207_s21 + $0x70] sm:$0xff] %v901_v47   ;;  %v469_v50 = vpop.f32.mrf.mxu2  ;;  %v489_v51 = vpop.f32.mrf.mxu3 }
  0xd6   : > { %v431_v52 = vpop.f32.mrf.mxu0  ;;  %v451_v53 = vpop.f32.mrf.mxu1  ;;  %v470_v62 = vadd.f32 %v1196_v26, %v469_v50  ;;  %v490_v63 = vadd.f32 %v1196_v26, %v489_v51 }
  0xd7   : > { %v432_v54 = vadd.f32 %v1196_v26, %v431_v52  ;;  %v452_v55 = vadd.f32 %v1196_v26, %v451_v53 }
  0xd8   : > { %v516_v4 = vmax.f32 %v470_v62, 0.0  ;;  %v524_v5 = vmax.f32 %v490_v63, 0.0 }
  0xd9   : > { %v501_v58 = vmax.f32 %v432_v54, 0.0  ;;  %v509_v59 = vmax.f32 %v452_v55, 0.0 }
  0xdb   : > { %v846_v60 = vpack.c.bf16 %v501_v58, %v500_v56  ;;  %v866_v61 = vpack.c.bf16 %v509_v59, %v508_v57 }
  0xdd   : > { %910 = vst [vmem:[%s1207_s21 + $0x18] sm:$0xff] %v846_v60   ;;  %v471_v0 = vpop.f32.mrf.mxu2  ;;  %v491_v1 = vpop.f32.mrf.mxu3 }
  0xde   : > { %914 = vst [vmem:[%s1207_s21 + $0x38] sm:$0xff] %v866_v61   ;;  %v472_v2 = vadd.f32 %v1196_v26, %v471_v0  ;;  %v492_v3 = vadd.f32 %v1196_v26, %v491_v1 }
  0xe0   : > { %v517_v6 = vmax.f32 %v472_v2, 0.0  ;;  %v525_v7 = vmax.f32 %v492_v3, 0.0 }
  0xe2   : > { %v886_v8 = vpack.c.bf16 %v517_v6, %v516_v4  ;;  %v906_v9 = vpack.c.bf16 %v525_v7, %v524_v5 }
  0xe4   : > { %918 = vst [vmem:[%s1207_s21 + $0x58] sm:$0xff] %v886_v8  }
  0xe5   : > { %922 = vst [vmem:[%s1207_s21 + $0x78] sm:$0xff] %v906_v9  }
  0xe6   : > { %1015 = shalt.err (!%p1012_p5)
}
  0xe7   : > { %s1069_s11 = smov 64   ;;  %s1070_s18 = smov 4  }
  0xe8   : > { %929 = dma.vmem_to_hbm [thread:$0]  (%p1131_p4), %s605_s15, 2048, %s607_s29, %s591_s30, %s1069_s11, %s1069_s11, %s1070_s18  }
  0xe9 PF: > { %p935_p6 = scmp.ge.s32.totalorder %s1066_s17, 2  ;;  %s621_s19 = sand.u32 1, %s1046_s12  }
  0xea   : > { %s622_s21 = scalar_lea.sflag [#allocation3], %s621_s19 }
  0xeb   : > { %p932_p7 = pnand %p935_p6, %p1138_p8 }
  0xed   : > { %p933_p9 = pneg %p932_p7 }
  0xef   : > { %1041 = dma.done.wait (%p933_p9), %s622_s21, 2048  }
  0xf0   : > { %1043 = vsyncadd (%p933_p9), %s622_s21, 4294965248  ;;  %s16_s17 = sadd.s32 1, %s1066_s17   ;;  %s1296_s12 = smov %s1050_s13 }
  0xf1   : > { %p13_p10 = scmp.ge.s32.totalorder %s16_s17, 4   ;;  %s1297_s13 = smov %s1054_s14 }
  0xf2   : > { %s1298_s14 = smov %s1144_s25  ;;  %s1299_s15 = smov %s1062_s16 }
  0xf3   : > { %s1300_s16 = smov %s1302_s20  ;;  %15 = sbr.rel (!%p13_p10) target bundleno = 4 (0x4), region = 73 }
  0xf8   :  { %628 = vsyncpa [#allocation3], 1 }
  0xf9   :  { %630 = vsyncpa [#allocation3 + $0x1], 1 }

</bundles_post_ra>
